<compile_context>
chip_gen: v5e
topology: v5e:2x2
jax: 0.10.0
libtpu: 0.0.40
codegen_flags: <defaults>
</compile_context>

<pallas_src>
import jax
import jax.numpy as jnp
from jax.experimental import pallas as pl
from jax.experimental.pallas import tpu as pltpu


def vae_kernel(x_ref, eps_ref,
               w1_ref, b1_ref,
               w2mu_ref, b2mu_ref, w2lv_ref, b2lv_ref,
               w3_ref, b3_ref, w4_ref, b4_ref,
               recon_ref, mu_ref, logvar_ref):
    x = x_ref[...]
    eps = eps_ref[...]

    # ---- encoder: Linear -> ReLU ----
    h1 = jnp.dot(x, w1_ref[...], preferred_element_type=jnp.float32) + b1_ref[...]
    h1 = jnp.maximum(h1, 0.0)

    # ---- encoder second Linear, split into mu / logvar matmuls (no lane slice) ----
    mu = jnp.dot(h1, w2mu_ref[...], preferred_element_type=jnp.float32) + b2mu_ref[...]
    logvar = jnp.dot(h1, w2lv_ref[...], preferred_element_type=jnp.float32) + b2lv_ref[...]

    # ---- reparameterize: z = mu + eps * exp(0.5 * logvar) ----
    z = mu + eps * jnp.exp(0.5 * logvar)

    # ---- decoder: Linear -> ReLU -> Linear -> Sigmoid ----
    d1 = jnp.dot(z, w3_ref[...], preferred_element_type=jnp.float32) + b3_ref[...]
    d1 = jnp.maximum(d1, 0.0)
    logits = jnp.dot(d1, w4_ref[...], preferred_element_type=jnp.float32) + b4_ref[...]

    recon_ref[...] = jax.nn.sigmoid(logits).astype(recon_ref.dtype)
    mu_ref[...] = mu.astype(mu_ref.dtype)
    logvar_ref[...] = logvar.astype(logvar_ref.dtype)


def vae_forward(x, eps, params, *, tile_b=None):
    """x: [B, input_dim] f32, eps: [B, latent_dim] f32 (the randn_like draw).

    params: (w1, b1, w2_mu, b2_mu, w2_logvar, b2_logvar, w3, b3, w4, b4)
            with weights stored [in, out], biases [1, out].
    Returns (recon, mu, logvar) exactly like VAE.forward.
    """
    B, input_dim = x.shape
    latent_dim = eps.shape[1]
    w1 = params[0]
    hidden_dim = w1.shape[1]

    if tile_b is None:
        # Largest tile <= 256 that divides B (per-step overhead amortization);
        # for small batches this collapses to a single grid step.
        tile_b = B
        for cand in (256, 128, 64, 32, 16, 8):
            if B % cand == 0:
                tile_b = cand
                break
    assert B % tile_b == 0, "batch must be divisible by tile_b"
    grid = (B // tile_b,)

    def act_spec(dim):
        # Batch-blocked activation / output tile.
        return pl.BlockSpec((tile_b, dim), lambda i: (i, 0))

    def resident_spec(arr):
        # Full-array block, constant index_map -> weights stay VMEM-resident
        # across grid iterations (no per-step re-DMA).
        nd = arr.ndim
        return pl.BlockSpec(arr.shape, lambda i, _nd=nd: (0,) * _nd)

    in_specs = [act_spec(input_dim), act_spec(latent_dim)] + [resident_spec(p) for p in params]
    out_specs = (act_spec(input_dim), act_spec(latent_dim), act_spec(latent_dim))

    flops = 2 * B * (input_dim * hidden_dim          # encoder Linear 1
                     + hidden_dim * 2 * latent_dim   # encoder Linear 2 (mu + logvar)
                     + latent_dim * hidden_dim       # decoder Linear 1
                     + hidden_dim * input_dim)       # decoder Linear 2
    transcendentals = B * (latent_dim + input_dim)   # exp(0.5*logvar) + sigmoid
    bytes_accessed = 4 * (x.size + eps.size
                          + sum(int(p.size) for p in params)
                          + B * input_dim + 2 * B * latent_dim)

    recon, mu, logvar = pl.pallas_call(
        vae_kernel,
        out_shape=(
            jax.ShapeDtypeStruct((B, input_dim), jnp.float32),
            jax.ShapeDtypeStruct((B, latent_dim), jnp.float32),
            jax.ShapeDtypeStruct((B, latent_dim), jnp.float32),
        ),
        grid=grid,
        in_specs=in_specs,
        out_specs=out_specs,
        compiler_params=pltpu.CompilerParams(
            dimension_semantics=("parallel",),     # split batch over TCs where available
            vmem_limit_bytes=32 * 1024 * 1024,     # explicit; safe on v7x 64 MiB VMEM
        ),
        cost_estimate=pl.CostEstimate(
            flops=flops,
            transcendentals=transcendentals,
            bytes_accessed=bytes_accessed,
        ),
    )(x, eps, *params)
    return recon, mu, logvar


def init_params(key, input_dim, hidden_dim, latent_dim):
    """PyTorch-style (uniform +/- 1/sqrt(fan_in)) init.
    Weights stored [in, out]; encoder layer 2 is pre-split into mu / logvar halves."""
    def linear(k, fan_in, fan_out):
        kw, kb = jax.random.split(k)
        bound = 1.0 / jnp.sqrt(float(fan_in))
        w = jax.random.uniform(kw, (fan_in, fan_out), jnp.float32, -bound, bound)
        b = jax.random.uniform(kb, (1, fan_out), jnp.float32, -bound, bound)
        return w, b

    k1, k2, k3, k4 = jax.random.split(key, 4)
    w1, b1 = linear(k1, input_dim, hidden_dim)            # encoder[0]
    w2, b2 = linear(k2, hidden_dim, 2 * latent_dim)       # encoder[2]
    w3, b3 = linear(k3, latent_dim, hidden_dim)           # decoder[0]
    w4, b4 = linear(k4, hidden_dim, input_dim)            # decoder[2]
    # Split encoder[2] into mu / logvar halves (matches torch.chunk(h, 2, dim=1)).
    w2_mu, w2_lv = w2[:, :latent_dim], w2[:, latent_dim:]
    b2_mu, b2_lv = b2[:, :latent_dim], b2[:, latent_dim:]
    return (w1, b1, w2_mu, b2_mu, w2_lv, b2_lv, w3, b3, w4, b4)


if __name__ == "__main__":
    # Module-consistent dims: hidden_dim=128, latent_dim=256 (from the spec);
    # input_dim chosen 128-aligned so all outputs are lane-dense. Small batch.
    batch, input_dim, hidden_dim, latent_dim = 8, 256, 128, 256

    key = jax.random.PRNGKey(0)
    k_x, k_eps, k_p = jax.random.split(key, 3)

    x = jax.random.uniform(k_x, (batch, input_dim), jnp.float32)
    # eps corresponds to torch.randn_like(std) in reparameterize; generated
    # deterministically here and fed into the kernel.
    eps = jax.random.normal(k_eps, (batch, latent_dim), jnp.float32)
    params = init_params(k_p, input_dim, hidden_dim, latent_dim)

    recon, mu, logvar = vae_forward(x, eps, params)
    jax.block_until_ready((recon, mu, logvar))

    # Pure-JAX reference check (recombine w2 halves and chunk, like the module).
    w1, b1, w2m, b2m, w2l, b2l, w3, b3, w4, b4 = params
    w2 = jnp.concatenate([w2m, w2l], axis=1)
    b2 = jnp.concatenate([b2m, b2l], axis=1)
    h1 = jnp.maximum(x @ w1 + b1, 0.0)
    h = h1 @ w2 + b2
    mu_r, logvar_r = h[:, :latent_dim], h[:, latent_dim:]
    z = mu_r + eps * jnp.exp(0.5 * logvar_r)
    d1 = jnp.maximum(z @ w3 + b3, 0.0)
    recon_r = jax.nn.sigmoid(d1 @ w4 + b4)

    assert recon.shape == (batch, input_dim)
    assert mu.shape == (batch, latent_dim) and logvar.shape == (batch, latent_dim)
    assert jnp.allclose(recon, recon_r, atol=1e-5)
    assert jnp.allclose(mu, mu_r, atol=1e-5)
    assert jnp.allclose(logvar, logvar_r, atol=1e-5)

    print("KERNEL_OK")
</pallas_src>

<mosaic_0001>
module attributes {stable_mosaic.version = 11 : i64} {
  func.func @vae_kernel(%arg0: i32, %arg1: memref<8x256xf32, #tpu.memory_space<vmem>>, %arg2: memref<8x256xf32, #tpu.memory_space<vmem>>, %arg3: memref<256x128xf32, #tpu.memory_space<vmem>>, %arg4: memref<1x128xf32, #tpu.memory_space<vmem>>, %arg5: memref<128x256xf32, #tpu.memory_space<vmem>>, %arg6: memref<1x256xf32, #tpu.memory_space<vmem>>, %arg7: memref<128x256xf32, #tpu.memory_space<vmem>>, %arg8: memref<1x256xf32, #tpu.memory_space<vmem>>, %arg9: memref<256x128xf32, #tpu.memory_space<vmem>>, %arg10: memref<1x128xf32, #tpu.memory_space<vmem>>, %arg11: memref<128x256xf32, #tpu.memory_space<vmem>>, %arg12: memref<1x256xf32, #tpu.memory_space<vmem>>, %arg13: memref<8x256xf32, #tpu.memory_space<vmem>>, %arg14: memref<8x256xf32, #tpu.memory_space<vmem>>, %arg15: memref<8x256xf32, #tpu.memory_space<vmem>>) attributes {dimension_semantics = [#tpu.dimension_semantics<parallel>], iteration_bounds = array<i64: 1>, scalar_prefetch = 0 : i64, scratch_operands = 0 : i64, tpu.core_type = #tpu.core_type<tc>, window_params = [{transform_indices = @transform_0, window_bounds = array<i64: 8, 256>}, {transform_indices = @transform_1, window_bounds = array<i64: 8, 256>}, {pipeline_mode = #tpu.pipeline_mode<synchronous>, transform_indices = @transform_2, window_bounds = array<i64: 256, 128>}, {pipeline_mode = #tpu.pipeline_mode<synchronous>, transform_indices = @transform_3, window_bounds = array<i64: 1, 128>}, {pipeline_mode = #tpu.pipeline_mode<synchronous>, transform_indices = @transform_4, window_bounds = array<i64: 128, 256>}, {pipeline_mode = #tpu.pipeline_mode<synchronous>, transform_indices = @transform_5, window_bounds = array<i64: 1, 256>}, {pipeline_mode = #tpu.pipeline_mode<synchronous>, transform_indices = @transform_6, window_bounds = array<i64: 128, 256>}, {pipeline_mode = #tpu.pipeline_mode<synchronous>, transform_indices = @transform_7, window_bounds = array<i64: 1, 256>}, {pipeline_mode = #tpu.pipeline_mode<synchronous>, transform_indices = @transform_8, window_bounds = array<i64: 256, 128>}, {pipeline_mode = #tpu.pipeline_mode<synchronous>, transform_indices = @transform_9, window_bounds = array<i64: 1, 128>}, {pipeline_mode = #tpu.pipeline_mode<synchronous>, transform_indices = @transform_10, window_bounds = array<i64: 128, 256>}, {pipeline_mode = #tpu.pipeline_mode<synchronous>, transform_indices = @transform_11, window_bounds = array<i64: 1, 256>}, {transform_indices = @transform_12, window_bounds = array<i64: 8, 256>}, {transform_indices = @transform_13, window_bounds = array<i64: 8, 256>}, {transform_indices = @transform_14, window_bounds = array<i64: 8, 256>}]} {
    %c0 = arith.constant 0 : index
    %c0_0 = arith.constant 0 : index
    %0 = vector.load %arg1[%c0, %c0_0] : memref<8x256xf32, #tpu.memory_space<vmem>>, vector<8x256xf32>
    %c0_1 = arith.constant 0 : index
    %c0_2 = arith.constant 0 : index
    %1 = vector.load %arg2[%c0_1, %c0_2] : memref<8x256xf32, #tpu.memory_space<vmem>>, vector<8x256xf32>
    %c0_3 = arith.constant 0 : index
    %c0_4 = arith.constant 0 : index
    %2 = vector.load %arg3[%c0_3, %c0_4] : memref<256x128xf32, #tpu.memory_space<vmem>>, vector<256x128xf32>
    %cst = arith.constant dense<0.000000e+00> : vector<8x128xf32>
    %3 = tpu.matmul %0, %2, %cst {dimension_numbers = #tpu.dot_dimension_numbers<[1], [0], [0], [1], [0, 0, 1, 1], [], []>} : vector<8x256xf32>, vector<256x128xf32>, vector<8x128xf32> -> vector<8x128xf32>
    %c0_5 = arith.constant 0 : index
    %c0_6 = arith.constant 0 : index
    %4 = vector.load %arg4[%c0_5, %c0_6] : memref<1x128xf32, #tpu.memory_space<vmem>>, vector<1x128xf32>
    %5 = vector.broadcast %4 : vector<1x128xf32> to vector<8x128xf32>
    %6 = arith.addf %3, %5 : vector<8x128xf32>
    %cst_7 = arith.constant 0.000000e+00 : f32
    %7 = vector.broadcast %cst_7 : f32 to vector<8x128xf32>
    %8 = arith.maximumf %6, %7 : vector<8x128xf32>
    %c0_8 = arith.constant 0 : index
    %c0_9 = arith.constant 0 : index
    %9 = vector.load %arg5[%c0_8, %c0_9] : memref<128x256xf32, #tpu.memory_space<vmem>>, vector<128x256xf32>
    %cst_10 = arith.constant dense<0.000000e+00> : vector<8x256xf32>
    %10 = tpu.matmul %8, %9, %cst_10 {dimension_numbers = #tpu.dot_dimension_numbers<[1], [0], [0], [1], [0, 0, 1, 1], [], []>} : vector<8x128xf32>, vector<128x256xf32>, vector<8x256xf32> -> vector<8x256xf32>
    %c0_11 = arith.constant 0 : index
    %c0_12 = arith.constant 0 : index
    %11 = vector.load %arg6[%c0_11, %c0_12] : memref<1x256xf32, #tpu.memory_space<vmem>>, vector<1x256xf32>
    %12 = vector.broadcast %11 : vector<1x256xf32> to vector<8x256xf32>
    %13 = arith.addf %10, %12 : vector<8x256xf32>
    %c0_13 = arith.constant 0 : index
    %c0_14 = arith.constant 0 : index
    %14 = vector.load %arg7[%c0_13, %c0_14] : memref<128x256xf32, #tpu.memory_space<vmem>>, vector<128x256xf32>
    %cst_15 = arith.constant dense<0.000000e+00> : vector<8x256xf32>
    %15 = tpu.matmul %8, %14, %cst_15 {dimension_numbers = #tpu.dot_dimension_numbers<[1], [0], [0], [1], [0, 0, 1, 1], [], []>} : vector<8x128xf32>, vector<128x256xf32>, vector<8x256xf32> -> vector<8x256xf32>
    %c0_16 = arith.constant 0 : index
    %c0_17 = arith.constant 0 : index
    %16 = vector.load %arg8[%c0_16, %c0_17] : memref<1x256xf32, #tpu.memory_space<vmem>>, vector<1x256xf32>
    %17 = vector.broadcast %16 : vector<1x256xf32> to vector<8x256xf32>
    %18 = arith.addf %15, %17 : vector<8x256xf32>
    %cst_18 = arith.constant 5.000000e-01 : f32
    %19 = vector.broadcast %cst_18 : f32 to vector<8x256xf32>
    %20 = arith.mulf %19, %18 : vector<8x256xf32>
    %21 = math.exp %20 : vector<8x256xf32>
    %22 = arith.mulf %1, %21 : vector<8x256xf32>
    %23 = arith.addf %13, %22 : vector<8x256xf32>
    %c0_19 = arith.constant 0 : index
    %c0_20 = arith.constant 0 : index
    %24 = vector.load %arg9[%c0_19, %c0_20] : memref<256x128xf32, #tpu.memory_space<vmem>>, vector<256x128xf32>
    %cst_21 = arith.constant dense<0.000000e+00> : vector<8x128xf32>
    %25 = tpu.matmul %23, %24, %cst_21 {dimension_numbers = #tpu.dot_dimension_numbers<[1], [0], [0], [1], [0, 0, 1, 1], [], []>} : vector<8x256xf32>, vector<256x128xf32>, vector<8x128xf32> -> vector<8x128xf32>
    %c0_22 = arith.constant 0 : index
    %c0_23 = arith.constant 0 : index
    %26 = vector.load %arg10[%c0_22, %c0_23] : memref<1x128xf32, #tpu.memory_space<vmem>>, vector<1x128xf32>
    %27 = vector.broadcast %26 : vector<1x128xf32> to vector<8x128xf32>
    %28 = arith.addf %25, %27 : vector<8x128xf32>
    %cst_24 = arith.constant 0.000000e+00 : f32
    %29 = vector.broadcast %cst_24 : f32 to vector<8x128xf32>
    %30 = arith.maximumf %28, %29 : vector<8x128xf32>
    %c0_25 = arith.constant 0 : index
    %c0_26 = arith.constant 0 : index
    %31 = vector.load %arg11[%c0_25, %c0_26] : memref<128x256xf32, #tpu.memory_space<vmem>>, vector<128x256xf32>
    %cst_27 = arith.constant dense<0.000000e+00> : vector<8x256xf32>
    %32 = tpu.matmul %30, %31, %cst_27 {dimension_numbers = #tpu.dot_dimension_numbers<[1], [0], [0], [1], [0, 0, 1, 1], [], []>} : vector<8x128xf32>, vector<128x256xf32>, vector<8x256xf32> -> vector<8x256xf32>
    %c0_28 = arith.constant 0 : index
    %c0_29 = arith.constant 0 : index
    %33 = vector.load %arg12[%c0_28, %c0_29] : memref<1x256xf32, #tpu.memory_space<vmem>>, vector<1x256xf32>
    %34 = vector.broadcast %33 : vector<1x256xf32> to vector<8x256xf32>
    %35 = arith.addf %32, %34 : vector<8x256xf32>
    %36 = arith.negf %35 : vector<8x256xf32>
    %37 = math.exp %36 : vector<8x256xf32>
    %cst_30 = arith.constant 1.000000e+00 : f32
    %38 = vector.broadcast %cst_30 : f32 to vector<8x256xf32>
    %39 = arith.addf %38, %37 : vector<8x256xf32>
    %40 = arith.divf %38, %39 : vector<8x256xf32>
    %c0_31 = arith.constant 0 : index
    %c0_32 = arith.constant 0 : index
    %41 = vector.load %arg13[%c0_31, %c0_32] : memref<8x256xf32, #tpu.memory_space<vmem>>, vector<8x256xf32>
    tpu.vector_store %arg13[%c0_31, %c0_32], %40 {strides = array<i32>} : memref<8x256xf32, #tpu.memory_space<vmem>>, vector<8x256xf32>,
    %c0_33 = arith.constant 0 : index
    %c0_34 = arith.constant 0 : index
    %42 = vector.load %arg14[%c0_33, %c0_34] : memref<8x256xf32, #tpu.memory_space<vmem>>, vector<8x256xf32>
    tpu.vector_store %arg14[%c0_33, %c0_34], %13 {strides = array<i32>} : memref<8x256xf32, #tpu.memory_space<vmem>>, vector<8x256xf32>,
    %c0_35 = arith.constant 0 : index
    %c0_36 = arith.constant 0 : index
    %43 = vector.load %arg15[%c0_35, %c0_36] : memref<8x256xf32, #tpu.memory_space<vmem>>, vector<8x256xf32>
    tpu.vector_store %arg15[%c0_35, %c0_36], %18 {strides = array<i32>} : memref<8x256xf32, #tpu.memory_space<vmem>>, vector<8x256xf32>,
    return
  }
  func.func @transform_0(%arg0: i32) -> (i32, i32) {
    %c0_i32 = arith.constant 0 : i32
    %c0_i32_0 = arith.constant 0 : i32
    return %arg0, %c0_i32 : i32, i32
  }
  func.func @transform_1(%arg0: i32) -> (i32, i32) {
    %c0_i32 = arith.constant 0 : i32
    %c0_i32_0 = arith.constant 0 : i32
    return %arg0, %c0_i32 : i32, i32
  }
  func.func @transform_2(%arg0: i32) -> (i32, i32) {
    %c0_i32 = arith.constant 0 : i32
    %c0_i32_0 = arith.constant 0 : i32
    %c0_i32_1 = arith.constant 0 : i32
    return %c0_i32, %c0_i32_0 : i32, i32
  }
  func.func @transform_3(%arg0: i32) -> (i32, i32) {
    %c0_i32 = arith.constant 0 : i32
    %c0_i32_0 = arith.constant 0 : i32
    %c0_i32_1 = arith.constant 0 : i32
    return %c0_i32, %c0_i32_0 : i32, i32
  }
  func.func @transform_4(%arg0: i32) -> (i32, i32) {
    %c0_i32 = arith.constant 0 : i32
    %c0_i32_0 = arith.constant 0 : i32
    %c0_i32_1 = arith.constant 0 : i32
    return %c0_i32, %c0_i32_0 : i32, i32
  }
  func.func @transform_5(%arg0: i32) -> (i32, i32) {
    %c0_i32 = arith.constant 0 : i32
    %c0_i32_0 = arith.constant 0 : i32
    %c0_i32_1 = arith.constant 0 : i32
    return %c0_i32, %c0_i32_0 : i32, i32
  }
  func.func @transform_6(%arg0: i32) -> (i32, i32) {
    %c0_i32 = arith.constant 0 : i32
    %c0_i32_0 = arith.constant 0 : i32
    %c0_i32_1 = arith.constant 0 : i32
    return %c0_i32, %c0_i32_0 : i32, i32
  }
  func.func @transform_7(%arg0: i32) -> (i32, i32) {
    %c0_i32 = arith.constant 0 : i32
    %c0_i32_0 = arith.constant 0 : i32
    %c0_i32_1 = arith.constant 0 : i32
    return %c0_i32, %c0_i32_0 : i32, i32
  }
  func.func @transform_8(%arg0: i32) -> (i32, i32) {
    %c0_i32 = arith.constant 0 : i32
    %c0_i32_0 = arith.constant 0 : i32
    %c0_i32_1 = arith.constant 0 : i32
    return %c0_i32, %c0_i32_0 : i32, i32
  }
  func.func @transform_9(%arg0: i32) -> (i32, i32) {
    %c0_i32 = arith.constant 0 : i32
    %c0_i32_0 = arith.constant 0 : i32
    %c0_i32_1 = arith.constant 0 : i32
    return %c0_i32, %c0_i32_0 : i32, i32
  }
  func.func @transform_10(%arg0: i32) -> (i32, i32) {
    %c0_i32 = arith.constant 0 : i32
    %c0_i32_0 = arith.constant 0 : i32
    %c0_i32_1 = arith.constant 0 : i32
    return %c0_i32, %c0_i32_0 : i32, i32
  }
  func.func @transform_11(%arg0: i32) -> (i32, i32) {
    %c0_i32 = arith.constant 0 : i32
    %c0_i32_0 = arith.constant 0 : i32
    %c0_i32_1 = arith.constant 0 : i32
    return %c0_i32, %c0_i32_0 : i32, i32
  }
  func.func @transform_12(%arg0: i32) -> (i32, i32) {
    %c0_i32 = arith.constant 0 : i32
    %c0_i32_0 = arith.constant 0 : i32
    return %arg0, %c0_i32 : i32, i32
  }
  func.func @transform_13(%arg0: i32) -> (i32, i32) {
    %c0_i32 = arith.constant 0 : i32
    %c0_i32_0 = arith.constant 0 : i32
    return %arg0, %c0_i32 : i32, i32
  }
  func.func @transform_14(%arg0: i32) -> (i32, i32) {
    %c0_i32 = arith.constant 0 : i32
    %c0_i32_0 = arith.constant 0 : i32
    return %arg0, %c0_i32 : i32, i32
  }
}

</mosaic_0001>

<bundles_post_ra>
// kernel: tpu_custom_call.1
= control target key start
LH: loop header
LB: loop body
LE: loop exit
PB: predicated region body
PF: predicated region fallthrough
CT: control target
= control target key end

     0   :  { %20 = vsyncpa [#allocation3], 0  ;;  %s1116_s0 = inlined_call_operand.hbm [shape: f32[8,256], index: 0, kind: input, shape index: {}]   ;;  %s1117_s1 = inlined_call_operand.hbm [shape: f32[8,256], index: 1, kind: input, shape index: {}]   ;;  %s1118_s2 = inlined_call_operand.hbm [shape: f32[256,128], index: 2, kind: input, shape index: {}]   ;;  %s1119_s3 = inlined_call_operand.hbm [shape: f32[1,128], index: 3, kind: input, shape index: {}]   ;;  %s1120_s4 = inlined_call_operand.hbm [shape: f32[128,256], index: 4, kind: input, shape index: {}]   ;;  %s1121_s5 = inlined_call_operand.vmem [shape: f32[1,256], index: 5, kind: input, shape index: {}]   ;;  %s1122_s6 = inlined_call_operand.hbm [shape: f32[128,256], index: 6, kind: input, shape index: {}]   ;;  %s1123_s7 = inlined_call_operand.vmem [shape: f32[1,256], index: 7, kind: input, shape index: {}]   ;;  %s1124_s8 = inlined_call_operand.hbm [shape: f32[256,128], index: 8, kind: input, shape index: {}]   ;;  %s1125_s9 = inlined_call_operand.vmem [shape: f32[1,128], index: 9, kind: input, shape index: {}]   ;;  %s1126_s10 = inlined_call_operand.hbm [shape: f32[128,256], index: 10, kind: input, shape index: {}]   ;;  %s1127_s11 = inlined_call_operand.vmem [shape: f32[1,256], index: 11, kind: input, shape index: {}]   ;;  %s1128_s12 = inlined_call_operand.hbm [shape: f32[8,256], index: 12, kind: output, shape index: {0}]   ;;  %s1129_s13 = inlined_call_operand.hbm [shape: f32[8,256], index: 13, kind: output, shape index: {1}]   ;;  %s1130_s14 = inlined_call_operand.hbm [shape: f32[8,256], index: 14, kind: output, shape index: {2}]  }
   0x1   :  { %21 = vsyncpa [#allocation6], 0 }
   0x2   :  { %22 = vsyncpa [#allocation9], 0 }
   0x3   :  { %23 = vsyncpa [#allocation12], 0 }
   0x4   :  { %24 = vsyncpa [#allocation15], 0 }
   0x5   :  { %25 = vsyncpa [#allocation4], 0  ;;  %s43_s15 = sshll.u32 %s1117_s1, 4  ;;  %s44_s15 = int_to_ptr.hbm [resolvable:$true] %s43_s15 }
   0x6   :  { %26 = vsyncpa [#allocation18], 0  ;;  %s972_s16 = smov [#allocation5]   ;;  %s67_s20 = sshll.u32 %s1119_s3, 4  ;;  %s68_s20 = int_to_ptr.hbm [resolvable:$true] %s67_s20 }
   0x7   :  { %s45_s17 = sshll.u32 %s972_s16, 4  ;;  %s973_s21 = smov [#allocation8]   ;;  %s46_s17 = int_to_ptr.vmem [resolvable:$true] %s45_s17 }
   0x8   :  { %48 = dma.hbm_to_vmem [thread:$0]  %s44_s15, 256, %s46_s17, [#allocation6]  }
   0x9   :  { %s69_s22 = sshll.u32 %s973_s21, 4  ;;  %s92_s25 = sshll.u32 %s1122_s6, 4  ;;  %s70_s22 = int_to_ptr.vmem [resolvable:$true] %s69_s22  ;;  %s93_s25 = int_to_ptr.hbm [resolvable:$true] %s92_s25 }
   0xa   :  { %72 = dma.hbm_to_vmem [thread:$0]  %s68_s20, 16, %s70_s22, [#allocation9]  }
   0xb   :  { %s974_s1 = smov [#allocation11]   ;;  %s32_s29 = sshll.u32 %s1116_s0, 4  ;;  %s33_s29 = int_to_ptr.hbm [resolvable:$true] %s32_s29 }
   0xc   :  { %s94_s26 = sshll.u32 %s974_s1, 4  ;;  %s975_s30 = smov 256   ;;  %s95_s26 = int_to_ptr.vmem [resolvable:$true] %s94_s26 }
   0xd   :  { %s976_s3 = smov 16   ;;  %s977_s15 = smov [#allocation2]  }
   0xe   :  { %100 = dma.hbm_to_vmem [thread:$0]  %s93_s25, 4096, %s95_s26, [#allocation12], %s975_s30, %s975_s30, %s976_s3  }
   0xf   :  { %s34_s16 = sshll.u32 %s977_s15, 4  ;;  %s53_s6 = sshll.u32 %s1118_s2, 4  ;;  %s35_s16 = int_to_ptr.vmem [resolvable:$true] %s34_s16  ;;  %s54_s6 = int_to_ptr.hbm [resolvable:$true] %s53_s6 }
  0x10   :  { %37 = dma.hbm_to_vmem [thread:$0]  %s33_s29, 256, %s35_s16, [#allocation3]  }
  0x11   :  { %s978_s19 = smov [#allocation7]   ;;  %s77_s22 = sshll.u32 %s1120_s4, 4  ;;  %s78_s22 = int_to_ptr.hbm [resolvable:$true] %s77_s22 }
  0x12   :  { %s55_s20 = sshll.u32 %s978_s19, 4  ;;  %s979_s23 = smov 128   ;;  %s56_s20 = int_to_ptr.vmem [resolvable:$true] %s55_s20 }
  0x13   :  { %s980_s24 = smov 8   ;;  %s981_s25 = smov [#allocation10]  }
  0x14   :  { %61 = dma.hbm_to_vmem [thread:$0]  %s54_s6, 4096, %s56_s20, [#allocation6], %s979_s23, %s979_s23, %s980_s24  }
  0x15   :  { %s79_s1 = sshll.u32 %s981_s25, 4  ;;  %s107_s2 = sshll.u32 %s1124_s8, 4  ;;  %s80_s1 = int_to_ptr.vmem [resolvable:$true] %s79_s1  ;;  %s108_s2 = int_to_ptr.hbm [resolvable:$true] %s107_s2 }
  0x16   :  { %85 = dma.hbm_to_vmem [thread:$0]  %s78_s22, 4096, %s80_s1, [#allocation9], %s975_s30, %s975_s30, %s976_s3  }
  0x17   :  { %s122_s4 = sshll.u32 %s1126_s10, 4  ;;  %s982_s15 = smov [#allocation13]   ;;  %s123_s4 = int_to_ptr.hbm [resolvable:$true] %s122_s4 }
  0x18   :  { %s109_s16 = sshll.u32 %s982_s15, 4  ;;  %s983_s17 = smov [#allocation14]   ;;  %s110_s16 = int_to_ptr.vmem [resolvable:$true] %s109_s16 }
  0x19   :  { %115 = dma.hbm_to_vmem [thread:$0]  %s108_s2, 4096, %s110_s16, [#allocation12], %s979_s23, %s979_s23, %s980_s24  }
  0x1a   :  { %s124_s18 = sshll.u32 %s983_s17, 4  ;;  %s125_s18 = int_to_ptr.vmem [resolvable:$true] %s124_s18 }
  0x1b   :  { %130 = dma.hbm_to_vmem [thread:$0]  %s123_s4, 4096, %s125_s18, [#allocation15], %s975_s30, %s975_s30, %s976_s3  }
  0x1c   :  { %958 = dma.done.wait [#allocation3], 256  }
  0x1d   :  { %959 = vsyncadd [#allocation3], 4294967040 }
  0x1e   :  { %960 = dma.done.wait [#allocation6], 4352  }
  0x1f   :  { %961 = vsyncadd [#allocation6], 4294962944 }
  0x20   :  { %962 = dma.done.wait [#allocation9], 4112  }
  0x21   :  { %963 = vsyncadd [#allocation9], 4294963184 }
  0x22   :  { %964 = dma.done.wait [#allocation12], 8192  }
  0x23   :  { %965 = vsyncadd [#allocation12], 4294959104 }
  0x24   :  { %966 = dma.done.wait [#allocation15], 4096  }
  0x25   :  { %967 = vsyncadd [#allocation15], 4294963200  ;;  %v184_v0 = vld [vmem:[#allocation7 + $0x78] sm:$0xff]  ;;  %v183_v1 = vld [vmem:[#allocation7 + $0x70] sm:$0xff]  ;;  %s629_s20 = sshll.u32 %s1129_s13, 4  ;;  %s984_s0 = smov [#allocation17]   ;;  %s630_s20 = int_to_ptr.hbm [resolvable:$true] %s629_s20 }
  0x26   :  { %v200_v2 = vld [vmem:[#allocation7 + $0xf8] sm:$0xff]  ;;  %205 = vmatpush.msra.mxu0 %v184_v0  ;;  %v199_v3 = vld [vmem:[#allocation7 + $0xf0] sm:$0xff]  ;;  %v182_v4 = vld [vmem:[#allocation7 + $0x68] sm:$0xff]  ;;  %s627_s21 = sshll.u32 %s984_s0, 4  ;;  %s985_s22 = smov [#allocation19]   ;;  %s628_s21 = int_to_ptr.vmem [resolvable:$true] %s627_s21 }
  0x27   :  { %225 = vmatpush.msra.mxu1 %v200_v2  ;;  %v198_v5 = vld [vmem:[#allocation7 + $0xe8] sm:$0xff]  ;;  %v181_v6 = vld [vmem:[#allocation7 + $0x60] sm:$0xff]  ;;  %v180_v8 = vld [vmem:[#allocation7 + $0x58] sm:$0xff]  ;;  %s638_s23 = sshll.u32 %s985_s22, 4  ;;  %s640_s25 = sshll.u32 %s1130_s14, 4  ;;  %s639_s23 = int_to_ptr.vmem [resolvable:$true] %s638_s23  ;;  %s641_s25 = int_to_ptr.hbm [resolvable:$true] %s640_s25 }
  0x28   :  { %206 = vmatpush.msra.mxu0 %v183_v1  ;;  %v197_v7 = vld [vmem:[#allocation7 + $0xe0] sm:$0xff]  ;;  %v196_v9 = vld [vmem:[#allocation7 + $0xd8] sm:$0xff]  ;;  %v179_v10 = vld [vmem:[#allocation7 + $0x50] sm:$0xff]  ;;  %s618_s2 = sshll.u32 %s1128_s12, 4  ;;  %s619_s2 = int_to_ptr.hbm [resolvable:$true] %s618_s2 }
  0x29   :  { %226 = vmatpush.msra.mxu1 %v199_v3  ;;  %v195_v11 = vld [vmem:[#allocation7 + $0xd0] sm:$0xff]  ;;  %v178_v12 = vld [vmem:[#allocation7 + $0x48] sm:$0xff]  ;;  %v277_v15 = vld [vmem:[#allocation10 + $0xf8] sm:$0xff] }
  0x2a   :  { %207 = vmatpush.msra.mxu0 %v182_v4  ;;  %v194_v13 = vld [vmem:[#allocation7 + $0xc8] sm:$0xff]  ;;  %v276_v14 = vld [vmem:[#allocation10 + $0xf0] sm:$0xff]  ;;  %v177_v16 = vld [vmem:[#allocation7 + $0x40] sm:$0xff]  ;;  %304 = vmatpush.msra.mxu3 %v277_v15 }
  0x2b   :  { %227 = vmatpush.msra.mxu1 %v198_v5  ;;  %v193_v17 = vld [vmem:[#allocation7 + $0xc0] sm:$0xff]  ;;  %284 = vmatpush.msra.mxu2 %v276_v14  ;;  %v176_v19 = vld [vmem:[#allocation7 + $0x38] sm:$0xff]  ;;  %v275_v20 = vld [vmem:[#allocation10 + $0xe8] sm:$0xff] }
  0x2c   :  { %208 = vmatpush.msra.mxu0 %v181_v6  ;;  %v274_v18 = vld [vmem:[#allocation10 + $0xe0] sm:$0xff]  ;;  %v192_v21 = vld [vmem:[#allocation7 + $0xb8] sm:$0xff]  ;;  %305 = vmatpush.msra.mxu3 %v275_v20  ;;  %v271_v25 = vld [vmem:[#allocation10 + $0xc8] sm:$0xff] }
  0x2d   :  { %228 = vmatpush.msra.mxu1 %v197_v7  ;;  %285 = vmatpush.msra.mxu2 %v274_v18  ;;  %v272_v22 = vld [vmem:[#allocation10 + $0xd0] sm:$0xff]  ;;  %v273_v23 = vld [vmem:[#allocation10 + $0xd8] sm:$0xff]  ;;  %v270_v24 = vld [vmem:[#allocation10 + $0xc0] sm:$0xff] }
  0x2e   :  { %209 = vmatpush.msra.mxu0 %v180_v8  ;;  %v175_v26 = vld [vmem:[#allocation7 + $0x30] sm:$0xff]  ;;  %306 = vmatpush.msra.mxu3 %v273_v23  ;;  %v269_v29 = vld [vmem:[#allocation10 + $0xb8] sm:$0xff]  ;;  %v174_v30 = vld [vmem:[#allocation7 + $0x28] sm:$0xff] }
  0x2f   :  { %229 = vmatpush.msra.mxu1 %v196_v9  ;;  %v191_v27 = vld [vmem:[#allocation7 + $0xb0] sm:$0xff]  ;;  %286 = vmatpush.msra.mxu2 %v272_v22  ;;  %v190_v31 = vld [vmem:[#allocation7 + $0xa8] sm:$0xff]  ;;  %v173_v34 = vld [vmem:[#allocation7 + $0x20] sm:$0xff] }
  0x30   :  { %210 = vmatpush.msra.mxu0 %v179_v10  ;;  %v268_v28 = vld [vmem:[#allocation10 + $0xb0] sm:$0xff]  ;;  %307 = vmatpush.msra.mxu3 %v271_v25  ;;  %v266_v32 = vld [vmem:[#allocation10 + $0xa0] sm:$0xff]  ;;  %v267_v33 = vld [vmem:[#allocation10 + $0xa8] sm:$0xff] }
  0x31   :  { %230 = vmatpush.msra.mxu1 %v195_v11  ;;  %287 = vmatpush.msra.mxu2 %v270_v24  ;;  %v189_v35 = vld [vmem:[#allocation7 + $0xa0] sm:$0xff]  ;;  %v264_v36 = vld [vmem:[#allocation10 + $0x90] sm:$0xff]  ;;  %v263_v41 = vld [vmem:[#allocation10 + $0x88] sm:$0xff] }
  0x32   :  { %211 = vmatpush.msra.mxu0 %v178_v12  ;;  %308 = vmatpush.msra.mxu3 %v269_v29  ;;  %v265_v37 = vld [vmem:[#allocation10 + $0x98] sm:$0xff]  ;;  %v262_v40 = vld [vmem:[#allocation10 + $0x80] sm:$0xff]  ;;  %v171_v42 = vld [vmem:[#allocation7 + $0x10] sm:$0xff] }
  0x33   :  { %231 = vmatpush.msra.mxu1 %v194_v13  ;;  %288 = vmatpush.msra.mxu2 %v268_v28  ;;  %v172_v38 = vld [vmem:[#allocation7 + $0x18] sm:$0xff]  ;;  %v187_v43 = vld [vmem:[#allocation7 + $0x90] sm:$0xff]  ;;  %v170_v46 = vld [vmem:[#allocation7 + $0x8] sm:$0xff] }
  0x34   :  { %212 = vmatpush.msra.mxu0 %v177_v16  ;;  %v188_v39 = vld [vmem:[#allocation7 + $0x98] sm:$0xff]  ;;  %309 = vmatpush.msra.mxu3 %v267_v33  ;;  %v186_v47 = vld [vmem:[#allocation7 + $0x88] sm:$0xff]  ;;  %v169_v50 = vld [vmem:[#allocation7] sm:$0xff] }
  0x35   :  { %232 = vmatpush.msra.mxu1 %v193_v17  ;;  %289 = vmatpush.msra.mxu2 %v266_v32  ;;  %v260_v44 = vld [vmem:[#allocation10 + $0x70] sm:$0xff]  ;;  %v261_v45 = vld [vmem:[#allocation10 + $0x78] sm:$0xff]  ;;  %v258_v48 = vld [vmem:[#allocation10 + $0x60] sm:$0xff] }
  0x36   :  { %213 = vmatpush.msra.mxu0 %v176_v19  ;;  %310 = vmatpush.msra.mxu3 %v265_v37  ;;  %v259_v49 = vld [vmem:[#allocation10 + $0x68] sm:$0xff]  ;;  %v185_v51 = vld [vmem:[#allocation7 + $0x80] sm:$0xff]  ;;  %v354_v54 = vld [vmem:[#allocation11 + $0xf0] sm:$0xff] }
  0x37   :  { %233 = vmatpush.msra.mxu1 %v192_v21  ;;  %290 = vmatpush.msra.mxu2 %v264_v36  ;;  %v165_v52 = vld [vmem:[#allocation2] sm:$0xff]  ;;  %v166_v53 = vld [vmem:[#allocation2 + $0x8] sm:$0xff]  ;;  %v256_v56 = vld [vmem:[#allocation10 + $0x50] sm:$0xff] }
  0x38   :  { %214 = vmatpush.msra.mxu0 %v175_v26  ;;  %311 = vmatpush.msra.mxu3 %v263_v41  ;;  %v355_v55 = vld [vmem:[#allocation11 + $0xf8] sm:$0xff]  ;;  %v352_v58 = vld [vmem:[#allocation11 + $0xe0] sm:$0xff]  ;;  %v353_v59 = vld [vmem:[#allocation11 + $0xe8] sm:$0xff] }
  0x39   :  { %234 = vmatpush.msra.mxu1 %v191_v27  ;;  %291 = vmatpush.msra.mxu2 %v262_v40  ;;  %v257_v57 = vld [vmem:[#allocation10 + $0x58] sm:$0xff]  ;;  %v254_v60 = vld [vmem:[#allocation10 + $0x40] sm:$0xff]  ;;  %v255_v61 = vld [vmem:[#allocation10 + $0x48] sm:$0xff] }
  0x3a   :  { %215 = vmatpush.msra.mxu0 %v174_v30  ;;  %312 = vmatpush.msra.mxu3 %v261_v45  ;;  %v350_v62 = vld [vmem:[#allocation11 + $0xd0] sm:$0xff]  ;;  %v351_v63 = vld [vmem:[#allocation11 + $0xd8] sm:$0xff]  ;;  %v348_v0 = vld [vmem:[#allocation11 + $0xc0] sm:$0xff] }
  0x3b   :  { %235 = vmatpush.msra.mxu1 %v190_v31  ;;  %292 = vmatpush.msra.mxu2 %v260_v44  ;;  %v349_v1 = vld [vmem:[#allocation11 + $0xc8] sm:$0xff]  ;;  %v346_v2 = vld [vmem:[#allocation11 + $0xb0] sm:$0xff]  ;;  %v347_v3 = vld [vmem:[#allocation11 + $0xb8] sm:$0xff] }
  0x3c   :  { %216 = vmatpush.msra.mxu0 %v173_v34  ;;  %313 = vmatpush.msra.mxu3 %v259_v49  ;;  %v344_v4 = vld [vmem:[#allocation11 + $0xa0] sm:$0xff]  ;;  %v345_v5 = vld [vmem:[#allocation11 + $0xa8] sm:$0xff]  ;;  %v342_v6 = vld [vmem:[#allocation11 + $0x90] sm:$0xff] }
  0x3d   :  { %236 = vmatpush.msra.mxu1 %v189_v35  ;;  %293 = vmatpush.msra.mxu2 %v258_v48  ;;  %v343_v7 = vld [vmem:[#allocation11 + $0x98] sm:$0xff]  ;;  %v340_v8 = vld [vmem:[#allocation11 + $0x80] sm:$0xff]  ;;  %v341_v9 = vld [vmem:[#allocation11 + $0x88] sm:$0xff] }
  0x3e   :  { %217 = vmatpush.msra.mxu0 %v172_v38  ;;  %314 = vmatpush.msra.mxu3 %v257_v57  ;;  %v338_v10 = vld [vmem:[#allocation11 + $0x70] sm:$0xff]  ;;  %v339_v11 = vld [vmem:[#allocation11 + $0x78] sm:$0xff]  ;;  %v336_v12 = vld [vmem:[#allocation11 + $0x60] sm:$0xff] }
  0x3f   :  { %237 = vmatpush.msra.mxu1 %v188_v39  ;;  %294 = vmatpush.msra.mxu2 %v256_v56  ;;  %v337_v13 = vld [vmem:[#allocation11 + $0x68] sm:$0xff]  ;;  %v334_v14 = vld [vmem:[#allocation11 + $0x50] sm:$0xff]  ;;  %v335_v15 = vld [vmem:[#allocation11 + $0x58] sm:$0xff] }
  0x40   :  { %218 = vmatpush.msra.mxu0 %v171_v42  ;;  %315 = vmatpush.msra.mxu3 %v255_v61  ;;  %v332_v16 = vld [vmem:[#allocation11 + $0x40] sm:$0xff]  ;;  %v333_v17 = vld [vmem:[#allocation11 + $0x48] sm:$0xff]  ;;  %v252_v18 = vld [vmem:[#allocation10 + $0x30] sm:$0xff] }
  0x41   :  { %238 = vmatpush.msra.mxu1 %v187_v43  ;;  %295 = vmatpush.msra.mxu2 %v254_v60  ;;  %v253_v19 = vld [vmem:[#allocation10 + $0x38] sm:$0xff]  ;;  %v330_v20 = vld [vmem:[#allocation11 + $0x30] sm:$0xff]  ;;  %v250_v22 = vld [vmem:[#allocation10 + $0x20] sm:$0xff] }
  0x42   :  { %219 = vmatpush.msra.mxu0 %v170_v46  ;;  %316 = vmatpush.msra.mxu3 %v253_v19  ;;  %v331_v21 = vld [vmem:[#allocation11 + $0x38] sm:$0xff]  ;;  %v251_v23 = vld [vmem:[#allocation10 + $0x28] sm:$0xff]  ;;  %v328_v24 = vld [vmem:[#allocation11 + $0x20] sm:$0xff] }
  0x43   :  { %239 = vmatpush.msra.mxu1 %v186_v47  ;;  %296 = vmatpush.msra.mxu2 %v252_v18  ;;  %v329_v25 = vld [vmem:[#allocation11 + $0x28] sm:$0xff]  ;;  %v248_v26 = vld [vmem:[#allocation10 + $0x10] sm:$0xff]  ;;  %v249_v27 = vld [vmem:[#allocation10 + $0x18] sm:$0xff] }
  0x44   :  { %220 = vmatpush.msra.mxu0 %v169_v50  ;;  %317 = vmatpush.msra.mxu3 %v251_v23  ;;  %v326_v28 = vld [vmem:[#allocation11 + $0x10] sm:$0xff]  ;;  %v327_v29 = vld [vmem:[#allocation11 + $0x18] sm:$0xff]  ;;  %v246_v30 = vld [vmem:[#allocation10] sm:$0xff] }
  0x45   :  { %240 = vmatpush.msra.mxu1 %v185_v51  ;;  %221 = vmatmul.f32.vlgmr.msra.gmra.mxu0 %v165_v52  ;;  %v247_v31 = vld [vmem:[#allocation10 + $0x8] sm:$0xff]  ;;  %v324_v32 = vld [vmem:[#allocation11] sm:$0xff]  ;;  %v427_v34 = vld [vmem:[#allocation13 + $0x78] sm:$0xff] }
  0x46   :  { %241 = vmatmul.f32.vlgmr.msra.gmra.mxu1 %v166_v53  ;;  %362 = vmatpush.msrb.mxu0 %v354_v54  ;;  %v325_v33 = vld [vmem:[#allocation11 + $0x8] sm:$0xff]  ;;  %v443_v35 = vld [vmem:[#allocation13 + $0xf8] sm:$0xff]  ;;  %v426_v36 = vld [vmem:[#allocation13 + $0x70] sm:$0xff] }
  0x47   :  { %382 = vmatpush.msrb.mxu1 %v355_v55  ;;  %297 = vmatpush.msra.mxu2 %v250_v22  ;;  %v442_v37 = vld [vmem:[#allocation13 + $0xf0] sm:$0xff]  ;;  %v425_v38 = vld [vmem:[#allocation13 + $0x68] sm:$0xff]  ;;  %v424_v40 = vld [vmem:[#allocation13 + $0x60] sm:$0xff] }
  0x48   :  { %363 = vmatpush.msrb.mxu0 %v352_v58  ;;  %318 = vmatpush.msra.mxu3 %v249_v27  ;;  %v441_v39 = vld [vmem:[#allocation13 + $0xe8] sm:$0xff]  ;;  %v440_v41 = vld [vmem:[#allocation13 + $0xe0] sm:$0xff]  ;;  %v423_v42 = vld [vmem:[#allocation13 + $0x58] sm:$0xff] }
  0x49   :  { %383 = vmatpush.msrb.mxu1 %v353_v59  ;;  %298 = vmatpush.msra.mxu2 %v248_v26  ;;  %v439_v43 = vld [vmem:[#allocation13 + $0xd8] sm:$0xff]  ;;  %v422_v44 = vld [vmem:[#allocation13 + $0x50] sm:$0xff]  ;;  %v421_v46 = vld [vmem:[#allocation13 + $0x48] sm:$0xff] }
  0x4a   :  { %364 = vmatpush.msrb.mxu0 %v350_v62  ;;  %319 = vmatpush.msra.mxu3 %v247_v31  ;;  %v438_v45 = vld [vmem:[#allocation13 + $0xd0] sm:$0xff]  ;;  %v437_v47 = vld [vmem:[#allocation13 + $0xc8] sm:$0xff]  ;;  %v680_v48 = vld [vmem:[#allocation8] ss:$0 sm:$0xff] }
  0x4b   :  { %384 = vmatpush.msrb.mxu1 %v351_v63  ;;  %299 = vmatpush.msra.mxu2 %v246_v30  ;;  %v420_v54 = vld [vmem:[#allocation13 + $0x40] sm:$0xff]  ;;  %v419_v56 = vld [vmem:[#allocation13 + $0x38] sm:$0xff]  ;;  %v418_v58 = vld [vmem:[#allocation13 + $0x30] sm:$0xff] }
  0x4c   :  { %365 = vmatpush.msrb.mxu0 %v348_v0  ;;  %468 = vmatpush.msrb.mxu3 %v443_v35  ;;  %v436_v55 = vld [vmem:[#allocation13 + $0xc0] sm:$0xff]  ;;  %v435_v57 = vld [vmem:[#allocation13 + $0xb8] sm:$0xff]  ;;  %v434_v59 = vld [vmem:[#allocation13 + $0xb0] sm:$0xff] }
  0x4d   :  { %385 = vmatpush.msrb.mxu1 %v349_v1  ;;  %448 = vmatpush.msrb.mxu2 %v427_v34  ;;  %v417_v60 = vld [vmem:[#allocation13 + $0x28] sm:$0xff]  ;;  %v416_v62 = vld [vmem:[#allocation13 + $0x20] sm:$0xff]  ;;  %v415_v0 = vld [vmem:[#allocation13 + $0x18] sm:$0xff] }
  0x4e   :  { %366 = vmatpush.msrb.mxu0 %v346_v2  ;;  %469 = vmatpush.msrb.mxu3 %v442_v37  ;;  %v433_v61 = vld [vmem:[#allocation13 + $0xa8] sm:$0xff]  ;;  %v432_v63 = vld [vmem:[#allocation13 + $0xa0] sm:$0xff]  ;;  %v431_v1 = vld [vmem:[#allocation13 + $0x98] sm:$0xff] }
  0x4f   :  { %386 = vmatpush.msrb.mxu1 %v347_v3  ;;  %449 = vmatpush.msrb.mxu2 %v426_v36  ;;  %v414_v2 = vld [vmem:[#allocation13 + $0x10] sm:$0xff]  ;;  %v356_v18 = vld [vmem:[%s1123_s7] sm:$0x3]  ;;  %v509_v19 = vld [vmem:[#allocation14 + $0xa0] sm:$0xff] }
  0x50   :  { %367 = vmatpush.msrb.mxu0 %v344_v4  ;;  %470 = vmatpush.msrb.mxu3 %v441_v39  ;;  %v430_v3 = vld [vmem:[#allocation13 + $0x90] sm:$0xff]  ;;  %v413_v4 = vld [vmem:[#allocation13 + $0x8] sm:$0xff]  ;;  %v359_v22 = vperm.slane %v356_v18, 1  ;;  %v505_v26 = vld [vmem:[#allocation14 + $0x80] sm:$0xff] }
  0x51   :  { %387 = vmatpush.msrb.mxu1 %v345_v5  ;;  %450 = vmatpush.msrb.mxu2 %v425_v38  ;;  %v429_v5 = vld [vmem:[#allocation13 + $0x88] sm:$0xff]  ;;  %v507_v23 = vld [vmem:[#allocation14 + $0x90] sm:$0xff]  ;;  %v501_v38 = vld [vmem:[#allocation14 + $0x60] sm:$0xff] }
  0x52   :  { %368 = vmatpush.msrb.mxu0 %v342_v6  ;;  %471 = vmatpush.msrb.mxu3 %v440_v41  ;;  %v412_v6 = vld [vmem:[#allocation13] sm:$0xff]  ;;  %v506_v27 = vld [vmem:[#allocation14 + $0x88] sm:$0xff] }
  0x53   :  { %388 = vmatpush.msrb.mxu1 %v343_v7  ;;  %451 = vmatpush.msrb.mxu2 %v424_v40  ;;  %v428_v7 = vld [vmem:[#allocation13 + $0x80] sm:$0xff]  ;;  %v502_v39 = vld [vmem:[#allocation14 + $0x68] sm:$0xff] }
  0x54   :  { %369 = vmatpush.msrb.mxu0 %v340_v8  ;;  %472 = vmatpush.msrb.mxu3 %v439_v43  ;;  %v519_v8 = vld [vmem:[#allocation14 + $0xf0] sm:$0xff] }
  0x55   :  { %389 = vmatpush.msrb.mxu1 %v341_v9  ;;  %452 = vmatpush.msrb.mxu2 %v423_v42  ;;  %v520_v9 = vld [vmem:[#allocation14 + $0xf8] sm:$0xff] }
  0x56   :  { %370 = vmatpush.msrb.mxu0 %v338_v10  ;;  %473 = vmatpush.msrb.mxu3 %v438_v45  ;;  %v517_v10 = vld [vmem:[#allocation14 + $0xe0] sm:$0xff]  ;;  %v500_v45 = vld [vmem:[#allocation14 + $0x58] sm:$0xff] }
  0x57   :  { %390 = vmatpush.msrb.mxu1 %v339_v11  ;;  %453 = vmatpush.msrb.mxu2 %v422_v44  ;;  %v518_v11 = vld [vmem:[#allocation14 + $0xe8] sm:$0xff]  ;;  %v499_v44 = vld [vmem:[#allocation14 + $0x50] sm:$0xff] }
  0x58   :  { %371 = vmatpush.msrb.mxu0 %v336_v12  ;;  %474 = vmatpush.msrb.mxu3 %v437_v47  ;;  %v515_v12 = vld [vmem:[#allocation14 + $0xd0] sm:$0xff] }
  0x59   :  { %391 = vmatpush.msrb.mxu1 %v337_v13  ;;  %454 = vmatpush.msrb.mxu2 %v421_v46  ;;  %v516_v13 = vld [vmem:[#allocation14 + $0xd8] sm:$0xff] }
  0x5a   :  { %372 = vmatpush.msrb.mxu0 %v334_v14  ;;  %475 = vmatpush.msrb.mxu3 %v436_v55  ;;  %v513_v14 = vld [vmem:[#allocation14 + $0xc0] sm:$0xff] }
  0x5b   :  { %392 = vmatpush.msrb.mxu1 %v335_v15  ;;  %455 = vmatpush.msrb.mxu2 %v420_v54  ;;  %v514_v15 = vld [vmem:[#allocation14 + $0xc8] sm:$0xff] }
  0x5c   :  { %373 = vmatpush.msrb.mxu0 %v332_v16  ;;  %476 = vmatpush.msrb.mxu3 %v435_v57  ;;  %v511_v16 = vld [vmem:[#allocation14 + $0xb0] sm:$0xff] }
  0x5d   :  { %393 = vmatpush.msrb.mxu1 %v333_v17  ;;  %456 = vmatpush.msrb.mxu2 %v419_v56  ;;  %v512_v17 = vld [vmem:[#allocation14 + $0xb8] sm:$0xff] }
  0x5e   :  { %374 = vmatpush.msrb.mxu0 %v330_v20  ;;  %477 = vmatpush.msrb.mxu3 %v434_v59  ;;  %v510_v20 = vld [vmem:[#allocation14 + $0xa8] sm:$0xff]  ;;  %v496_v59 = vld [vmem:[#allocation14 + $0x38] sm:$0xff] }
  0x5f   :  { %394 = vmatpush.msrb.mxu1 %v331_v21  ;;  %457 = vmatpush.msrb.mxu2 %v418_v58  ;;  %v358_v21 = vperm.slane %v356_v18, 0  ;;  %v495_v58 = vld [vmem:[#allocation14 + $0x30] sm:$0xff] }
  0x60   :  { %375 = vmatpush.msrb.mxu0 %v328_v24  ;;  %478 = vmatpush.msrb.mxu3 %v433_v61  ;;  %v508_v24 = vld [vmem:[#allocation14 + $0x98] sm:$0xff]  ;;  %v494_v61 = vld [vmem:[#allocation14 + $0x28] sm:$0xff] }
  0x61   :  { %395 = vmatpush.msrb.mxu1 %v329_v25  ;;  %458 = vmatpush.msrb.mxu2 %v417_v60  ;;  %v278_v25 = vld [vmem:[%s1121_s5] sm:$0x3]  ;;  %v493_v60 = vld [vmem:[#allocation14 + $0x20] sm:$0xff] }
  0x62   :  { %376 = vmatpush.msrb.mxu0 %v326_v28  ;;  %479 = vmatpush.msrb.mxu3 %v432_v63  ;;  %v280_v34 = vperm.slane %v278_v25, 0  ;;  %v281_v35 = vperm.slane %v278_v25, 1  ;;  %v492_v63 = vld [vmem:[#allocation14 + $0x18] sm:$0xff] }
  0x63   :  { %396 = vmatpush.msrb.mxu1 %v327_v29  ;;  %459 = vmatpush.msrb.mxu2 %v416_v62  ;;  %v491_v62 = vld [vmem:[#allocation14 + $0x10] sm:$0xff] }
  0x64   :  { %377 = vmatpush.msrb.mxu0 %v324_v32  ;;  %480 = vmatpush.msrb.mxu3 %v431_v1  ;;  %v503_v32 = vld [vmem:[#allocation14 + $0x70] sm:$0xff]  ;;  %v490_v1 = vld [vmem:[#allocation14 + $0x8] sm:$0xff] }
  0x65   :  { %397 = vmatpush.msrb.mxu1 %v325_v33  ;;  %460 = vmatpush.msrb.mxu2 %v415_v0  ;;  %v504_v33 = vld [vmem:[#allocation14 + $0x78] sm:$0xff]  ;;  %v489_v0 = vld [vmem:[#allocation14] sm:$0xff] }
  0x66   :  { %481 = vmatpush.msrb.mxu3 %v430_v3  ;;  %527 = vmatpush.msra.mxu0 %v519_v8  ;;  %v521_v8 = vld [vmem:[%s1127_s11] sm:$0x3]  ;;  %s986_s11 = smov [#allocation16]  }
  0x67   :  { %461 = vmatpush.msrb.mxu2 %v414_v2  ;;  %547 = vmatpush.msra.mxu1 %v520_v9  ;;  %v681_v2 = vld [vmem:[%s1125_s9] ss:$0 sm:$0xff]  ;;  %v523_v9 = vperm.slane %v521_v8, 0  ;;  %s616_s13 = sshll.u32 %s986_s11, 4  ;;  %s617_s13 = int_to_ptr.vmem [resolvable:$true] %s616_s13 }
  0x68   :  { %482 = vmatpush.msrb.mxu3 %v429_v5  ;;  %528 = vmatpush.msra.mxu0 %v517_v10  ;;  %v524_v10 = vperm.slane %v521_v8, 1 }
  0x69   :  { %462 = vmatpush.msrb.mxu2 %v413_v4  ;;  %548 = vmatpush.msra.mxu1 %v518_v11 }
  0x6a   :  { %483 = vmatpush.msrb.mxu3 %v428_v7  ;;  %529 = vmatpush.msra.mxu0 %v515_v12 }
  0x6b   :  { %463 = vmatpush.msrb.mxu2 %v412_v6  ;;  %549 = vmatpush.msra.mxu1 %v516_v13 }
  0x6c   :  { %530 = vmatpush.msra.mxu0 %v513_v14 }
  0x6d   :  { %550 = vmatpush.msra.mxu1 %v514_v15 }
  0x6e   :  { %531 = vmatpush.msra.mxu0 %v511_v16 }
  0x6f   :  { %551 = vmatpush.msra.mxu1 %v512_v17 }
  0x70   :  { %532 = vmatpush.msra.mxu0 %v509_v19 }
  0x71   :  { %552 = vmatpush.msra.mxu1 %v510_v20 }
  0x72   :  { %533 = vmatpush.msra.mxu0 %v507_v23 }
  0x73   :  { %553 = vmatpush.msra.mxu1 %v508_v24 }
  0x74   :  { %534 = vmatpush.msra.mxu0 %v505_v26 }
  0x75   :  { %554 = vmatpush.msra.mxu1 %v506_v27 }
  0x76   :  { %535 = vmatpush.msra.mxu0 %v503_v32 }
  0x77   :  { %555 = vmatpush.msra.mxu1 %v504_v33 }
  0x78   :  { %536 = vmatpush.msra.mxu0 %v501_v38 }
  0x79   :  { %556 = vmatpush.msra.mxu1 %v502_v39 }
  0x7a   :  { %537 = vmatpush.msra.mxu0 %v499_v44 }
  0x7b   :  { %557 = vmatpush.msra.mxu1 %v500_v45 }
  0xc2   :  { %v222_v49 = vpop.f32.mrf.mxu0 }
  0xc3   :  { %v242_v50 = vpop.f32.mrf.mxu1  ;;  %v223_v51 = vadd.f32 %v680_v48, %v222_v49  ;;  %v497_v48 = vld [vmem:[#allocation14 + $0x40] sm:$0xff]  ;;  %v498_v49 = vld [vmem:[#allocation14 + $0x48] sm:$0xff] }
  0xc4   :  { %538 = vmatpush.msra.mxu0 %v497_v48  ;;  %558 = vmatpush.msra.mxu1 %v498_v49 }
  0xc5   :  { %v243_v52 = vadd.f32 %v242_v50, %v223_v51  ;;  %v167_v50 = vld [vmem:[#allocation5] sm:$0xff]  ;;  %v168_v51 = vld [vmem:[#allocation5 + $0x8] sm:$0xff] }
  0xc6   :  { %539 = vmatpush.msra.mxu0 %v495_v58  ;;  %559 = vmatpush.msra.mxu1 %v496_v59 }
  0xc7   :  { %v245_v53 = vmax.f32 %v243_v52, 0.0 }
  0xc8   :  { %540 = vmatpush.msra.mxu0 %v493_v60  ;;  %560 = vmatpush.msra.mxu1 %v494_v61 }
  0xc9   :  { %300 = vmatmul.f32.vlgmr.msra.gmra.mxu2 %v245_v53  ;;  %320 = vmatmul.f32.vlgmr.msra.gmra.mxu3 %v245_v53 }
  0xca   :  { %378 = vmatmul.f32.vlgmr.msrb.gmra.mxu0 %v245_v53  ;;  %398 = vmatmul.f32.vlgmr.msrb.gmra.mxu1 %v245_v53 }
  0xcb   :  { %541 = vmatpush.msra.mxu0 %v491_v62  ;;  %561 = vmatpush.msra.mxu1 %v492_v63 }
  0xcd   :  { %542 = vmatpush.msra.mxu0 %v489_v0  ;;  %562 = vmatpush.msra.mxu1 %v490_v1 }
 0x147   :  { %v379_v28 = vpop.f32.mrf.mxu0  ;;  %v399_v29 = vpop.f32.mrf.mxu1 }
 0x148   :  { %v380_v30 = vadd.f32 %v379_v28, %v358_v21  ;;  %v400_v31 = vadd.f32 %v399_v29, %v359_v22 }
 0x14a   :  { %v402_v36 = vmul.f32 0.5, %v380_v30  ;;  %609 = vst [vmem:[#allocation19] sm:$0xff] %v380_v30  ;;  %v403_v37 = vmul.f32 0.5, %v400_v31 }
 0x14b   :  { %610 = vst [vmem:[#allocation19 + $0x8] sm:$0xff] %v400_v31 }
 0x14c   :  { %v404_v40 = vmul.f32 1.442695, %v402_v36  ;;  %v406_v41 = vmul.f32 1.442695, %v403_v37  ;;  %v301_v42 = vpop.f32.mrf.mxu2  ;;  %v321_v43 = vpop.f32.mrf.mxu3 }
 0x14d   :  { %v302_v46 = vadd.f32 %v301_v42, %v280_v34  ;;  %v322_v47 = vadd.f32 %v321_v43, %v281_v35 }
 0x14e   :  { %682 = vpow2.f32 %v404_v40 }
 0x14f   :  { %684 = vpow2.f32 %v406_v41  ;;  %607 = vst [vmem:[#allocation17] sm:$0xff] %v302_v46 }
 0x150   :  { %608 = vst [vmem:[#allocation17 + $0x8] sm:$0xff] %v322_v47 }
 0x151   :  { %632 = dma.vmem_to_hbm [thread:$0]  %s628_s21, 256, %s630_s20, [#allocation18]  }
 0x152   :  { %643 = dma.vmem_to_hbm [thread:$0]  %s639_s23, 256, %s641_s25, [#allocation18]  }
 0x154   :  { %v683_v52 = vpop.eup %682 }
 0x155   :  { %v685_v53 = vpop.eup %684  ;;  %v408_v54 = vmul.f32 %v683_v52, %v167_v50 }
 0x156   :  { %v409_v55 = vmul.f32 %v685_v53, %v168_v51 }
 0x157   :  { %v410_v56 = vadd.f32 %v408_v54, %v302_v46 }
 0x158   :  { %v411_v57 = vadd.f32 %v409_v55, %v322_v47 }
 0x159   :  { %464 = vmatmul.f32.vlgmr.msrb.gmra.mxu2 %v410_v56 }
 0x15a   :  { %484 = vmatmul.f32.vlgmr.msrb.gmra.mxu3 %v411_v57 }
 0x1dc   :  { %v465_v3 = vpop.f32.mrf.mxu2 }
 0x1dd   :  { %v466_v4 = vadd.f32 %v681_v2, %v465_v3  ;;  %v485_v5 = vpop.f32.mrf.mxu3 }
 0x1df   :  { %v486_v6 = vadd.f32 %v485_v5, %v466_v4 }
 0x1e1   :  { %v488_v7 = vmax.f32 %v486_v6, 0.0 }
 0x1e3   :  { %543 = vmatmul.f32.vlgmr.msra.gmra.mxu0 %v488_v7  ;;  %563 = vmatmul.f32.vlgmr.msra.gmra.mxu1 %v488_v7 }
 0x260   :  { %v544_v11 = vpop.f32.mrf.mxu0  ;;  %v564_v12 = vpop.f32.mrf.mxu1 }
 0x261   :  { %v545_v13 = vadd.f32 %v544_v11, %v523_v9  ;;  %v565_v14 = vadd.f32 %v564_v12, %v524_v10 }
 0x263   :  { %v663_v15 = vmul.f32 -1.442695, %v545_v13  ;;  %v664_v16 = vmul.f32 -1.442695, %v565_v14 }
 0x265   :  { %686 = vpow2.f32 %v663_v15 }
 0x266   :  { %688 = vpow2.f32 %v664_v16 }
 0x26b   :  { %v687_v17 = vpop.eup %686 }
 0x26c   :  { %v689_v18 = vpop.eup %688  ;;  %v573_v19 = vadd.f32 1.0, %v687_v17 }
 0x26d   :  { %v574_v20 = vadd.f32 1.0, %v689_v18 }
 0x26e   :  { %690 = vrcp.f32 %v573_v19  ;;  %v586_v27 = vand.u32 2147483648, %v573_v19  ;;  %v584_v29 = vand.u32 2147483647, %v573_v19  ;;  %vm580_vm2 = vweird.f32 %v573_v19 }
 0x26f   :  { %692 = vrcp.f32 %v574_v20  ;;  %v601_v30 = vand.u32 2147483648, %v574_v20  ;;  %v599_v32 = vand.u32 2147483647, %v574_v20  ;;  %vm595_vm4 = vweird.f32 %v574_v20 }
 0x270   :  { %v587_v34 = vor.u32 1.1754944e-38, %v586_v27  ;;  %vm585_vm5 = vcmp.eq.f32.partialorder %v584_v29, 8.507059e+37 }
 0x271   :  { %v602_v37 = vor.u32 1.1754944e-38, %v601_v30  ;;  %vm600_vm7 = vcmp.eq.f32.partialorder %v599_v32, 8.507059e+37 }
 0x274   :  { %v691_v21 = vpop.eup %690 }
 0x275   :  { %v693_v22 = vpop.eup %692  ;;  %v576_v23 = vmul.f32 %v691_v21, %v573_v19  ;;  %vm581_vm0 = vweird.f32 %v691_v21 }
 0x276   :  { %v591_v24 = vmul.f32 %v693_v22, %v574_v20  ;;  %vm596_vm1 = vweird.f32 %v693_v22  ;;  %vm582_vm3 = vmor %vm580_vm2, %vm581_vm0 }
 0x277   :  { %v577_v25 = vsub.f32 1.0, %v576_v23  ;;  %vm597_vm6 = vmor %vm595_vm4, %vm596_vm1 }
 0x278   :  { %v592_v26 = vsub.f32 1.0, %v591_v24 }
 0x279   :  { %v578_v28 = vmul.f32 %v691_v21, %v577_v25 }
 0x27a   :  { %v593_v31 = vmul.f32 %v693_v22, %v592_v26 }
 0x27b   :  { %v579_v33 = vadd.f32 %v691_v21, %v578_v28 }
 0x27c   :  { %v594_v35 = vadd.f32 %v693_v22, %v593_v31 }
 0x27d   :  { %v583_v36 = vsel %vm582_vm3, %v691_v21, %v579_v33 }
 0x27e   :  { %v588_v38 = vsel %vm585_vm5, %v587_v34, %v583_v36  ;;  %v598_v39 = vsel %vm597_vm6, %v693_v22, %v594_v35 }
 0x27f   :  { %v603_v40 = vsel %vm600_vm7, %v602_v37, %v598_v39  ;;  %605 = vst [vmem:[#allocation16] sm:$0xff] %v588_v38 }
 0x280   :  { %606 = vst [vmem:[#allocation16 + $0x8] sm:$0xff] %v603_v40 }
 0x281   :  { %621 = dma.vmem_to_hbm [thread:$0]  %s617_s13, 256, %s619_s2, [#allocation4]  }
 0x282   :  { %968 = dma.done.wait [#allocation4], 256  }
 0x283   :  { %969 = vsyncadd [#allocation4], 4294967040 }
 0x284   :  { %970 = dma.done.wait [#allocation18], 512  }
 0x285   :  { %971 = vsyncadd [#allocation18], 4294966784 }
 0x286   :  { %656 = vsyncpa [#allocation3], 1 }
 0x287   :  { %657 = vsyncpa [#allocation6], 1 }
 0x288   :  { %658 = vsyncpa [#allocation9], 1 }
 0x289   :  { %659 = vsyncpa [#allocation12], 1 }
 0x28a   :  { %660 = vsyncpa [#allocation15], 1 }
 0x28b   :  { %661 = vsyncpa [#allocation4], 1 }
 0x28c   :  { %662 = vsyncpa [#allocation18], 1 }

</bundles_post_ra>
